<compile_context>
chip_gen: v5e
topology: v5e:2x2
jax: 0.10.0
libtpu: 0.0.40
codegen_flags: <defaults>
</compile_context>

<pallas_src>
import jax
import jax.numpy as jnp
from jax import lax
from jax.experimental import pallas as pl
from jax.experimental.pallas import tpu as pltpu


_CHUNK = 512                               # nodes per in-kernel compute step
_LANES = 128
_VMEM_STREAM_BUDGET = 28 * 1024 * 1024     # double-buffered streamed blocks
_VMEM_LIMIT = 40 * 1024 * 1024             # scoped VMEM limit (v5e/v6e/v7x safe)


def _round_down(x, m):
    return (x // m) * m


def _round_up8(x):
    return ((x + 7) // 8) * 8


def _make_sage_kernel(masked):
    """Build the kernel body.  `masked` selects the mask / no-mask variant."""

    def kernel(*refs):
        if masked:
            (xs_ref, xn_ref, mk_ref, wn_ref, bn_ref, e_ref,
             wself_ref, wpool_ref, out_ref) = refs
        else:
            (xs_ref, xn_ref, wn_ref, bn_ref,
             wself_ref, wpool_ref, out_ref) = refs
            mk_ref = e_ref = None

        tile = xs_ref.shape[0]              # nodes in this grid step
        rows = xn_ref.shape[0]              # tile * S // pack  (packed rows)
        rpn = rows // tile                  # packed rows per node
        width = wn_ref.shape[1]             # pack * H
        hdim = wpool_ref.shape[0]           # H
        chunk = min(_CHUNK, tile)
        assert tile % chunk == 0            # guaranteed by the wrapper
        n_chunks = tile // chunk
        crows = chunk * rpn

        # Grid-invariant small operands: load once per grid step.
        wn = wn_ref[...]                    # (pack*F, pack*H) bf16 block-diag Wn^T
        bn = bn_ref[...]                    # (1, pack*H)      f32 tiled bias
        wself = wself_ref[...]              # (F, 2H)          bf16 [Ws^T | 0]
        wpool = wpool_ref[...]              # (H, 2H)          bf16 [0 | Wp^T]
        e = e_ref[...] if masked else None  # (pack, pack*H)   bf16 mask expander

        def body(c, carry):
            n0 = pl.multiple_of(c * chunk, chunk)
            r0 = pl.multiple_of(c * crows, crows)

            # fc_neigh on the packed layout: each row holds `pack` samples and
            # the block-diagonal Wn^T projects every sample into its own H-wide
            # lane group.  bf16 MXU inputs, f32 accumulation.
            xn = xn_ref[pl.ds(r0, crows), :].astype(jnp.bfloat16)
            z = jnp.dot(xn, wn, preferred_element_type=jnp.float32)
            hn = jnp.maximum(z + bn, 0.0)                     # (crows, pack*H) f32
            if masked:
                # Broadcast each 0/1 sample mask over its H-wide lane group
                # (exact: every column of `e` contains a single 1).
                mk = mk_ref[pl.ds(r0, crows), :].astype(jnp.bfloat16)
                hn = hn * jnp.dot(mk, e, preferred_element_type=jnp.float32)

            # Max over the rpn consecutive rows belonging to each node (the
            # reshape only splits the leading/sublane dim -> layout preserving)
            gmax = jnp.max(hn.reshape(chunk, rpn, width), axis=1)
            # ... then over the `pack` lane groups via cheap XLU lane rotations.
            shift = width // 2
            while shift >= hdim:
                gmax = jnp.maximum(gmax, pltpu.roll(gmax, shift=shift, axis=1))
                shift //= 2
            pooled = gmax[:, :hdim].astype(jnp.bfloat16)      # (chunk, H)

            # Fused fc_self / fc_pool directly in the concatenated layout:
            #   [h_self | h_pool] = x_self @ [Ws^T | 0] + pooled @ [0 | Wp^T]
            xs = xs_ref[pl.ds(n0, chunk), :].astype(jnp.bfloat16)
            out = jnp.dot(xs, wself, preferred_element_type=jnp.float32)
            out = out + jnp.dot(pooled, wpool, preferred_element_type=jnp.float32)
            out_ref[pl.ds(n0, chunk), :] = out.astype(out_ref.dtype)
            return carry

        lax.fori_loop(0, n_chunks, body, None)

    return kernel


def sage_layer_forward(x_self, x_neigh, mask, w_self, w_neigh, b_neigh, w_pool,
                       *, tile_nodes=8192, out_dtype=jnp.bfloat16):
    """x_self: (B,P,F)  x_neigh: (B,P,S,F)  mask: (B,P,S,1) or None -> (B,P,2H)."""
    B, P, F = x_self.shape
    S = x_neigh.shape[2]
    H = w_self.shape[0]
    N = B * P

    assert x_neigh.shape == (B, P, S, F)
    assert 128 % F == 0, "packed layout expects input_feature_size to divide 128"
    pack = 128 // F
    assert pack & (pack - 1) == 0
    assert S % pack == 0, "packed layout expects sample_size % (128 // F) == 0"
    rpn = S // pack                              # packed rows per node
    masked = mask is not None
    out_itemsize = jnp.dtype(out_dtype).itemsize

    # ---- node-tile selection (VMEM-budgeted, >=2 grid steps when possible) ---
    # Per-node bytes of ONE pipeline buffer, including lane padding of the
    # narrow x_self (F lanes) and mask (`pack` lanes) blocks to 128 lanes.
    per_node = rpn * _LANES * 4 + _LANES * 4 + _LANES * out_itemsize
    if masked:
        per_node += rpn * _LANES * 4
    per_node *= 2                                # double-buffered by the pipeline

    tile = min(int(tile_nodes), _round_up8(N))
    if N >= 16:
        # Keep >=2 grid steps so ("parallel",) can shard across both v7x cores.
        tile = min(tile, _round_up8(pl.cdiv(N, 2)))
    tile = min(tile, max(8, _round_down(_VMEM_STREAM_BUDGET // per_node, 8)))
    if tile >= _CHUNK:
        tile = _round_down(tile, _CHUNK)         # in-kernel chunk loop divisibility
    else:
        tile = max(8, _round_down(tile, 8))
    grid = (pl.cdiv(N, tile),)                   # ragged last block handled by Pallas
    rows_tile = tile * rpn

    # ---- operands: big arrays streamed in native f32 (no wrapper cast / pad) --
    xs = x_self.reshape(N, F)                                        # (N, F) f32
    xn = x_neigh.reshape(N * rpn, pack * F)                          # lane-dense rows
    f32 = jnp.float32
    wn = jnp.kron(jnp.eye(pack, dtype=f32),
                  w_neigh.T.astype(f32)).astype(jnp.bfloat16)        # (pack*F, pack*H)
    bn = jnp.tile(b_neigh.reshape(1, H).astype(f32), (1, pack))      # (1, pack*H)
    wself = jnp.concatenate([w_self.T.astype(f32), jnp.zeros((F, H), f32)],
                            axis=1).astype(jnp.bfloat16)             # (F, 2H) [Ws^T|0]
    wpool = jnp.concatenate([jnp.zeros((H, H), f32), w_pool.T.astype(f32)],
                            axis=1).astype(jnp.bfloat16)             # (H, 2H) [0|Wp^T]

    flops = 2 * N * S * F * H + 2 * N * F * 2 * H + 2 * N * H * 2 * H
    bytes_accessed = ((xs.size + xn.size + bn.size) * 4
                      + (wn.size + wself.size + wpool.size) * 2
                      + N * 2 * H * out_itemsize)
    if masked:
        flops += 2 * N * S * pack * H
        bytes_accessed += N * S * 4

    compiler_params = pltpu.CompilerParams(
        dimension_semantics=("parallel",),       # v7x: both TCs split node tiles
        vmem_limit_bytes=_VMEM_LIMIT)
    cost = pl.CostEstimate(flops=int(flops), transcendentals=0,
                           bytes_accessed=int(bytes_accessed))

    if masked:
        mk = mask.reshape(N * rpn, pack).astype(f32)                 # per-sample 0/1
        e = jnp.repeat(jnp.eye(pack, dtype=f32), H, axis=1).astype(jnp.bfloat16)
        in_specs = [
            pl.BlockSpec((tile, F), lambda i: (i, 0)),               # x_self
            pl.BlockSpec((rows_tile, pack * F), lambda i: (i, 0)),   # packed x_neigh
            pl.BlockSpec((rows_tile, pack), lambda i: (i, 0)),       # packed mask
            pl.BlockSpec((pack * F, pack * H), lambda i: (0, 0)),    # block-diag Wn^T
            pl.BlockSpec((1, pack * H), lambda i: (0, 0)),           # tiled bias
            pl.BlockSpec((pack, pack * H), lambda i: (0, 0)),        # mask expander
            pl.BlockSpec((F, 2 * H), lambda i: (0, 0)),              # [Ws^T | 0]
            pl.BlockSpec((H, 2 * H), lambda i: (0, 0)),              # [0 | Wp^T]
        ]
        operands = (xs, xn, mk, wn, bn, e, wself, wpool)
    else:
        in_specs = [
            pl.BlockSpec((tile, F), lambda i: (i, 0)),
            pl.BlockSpec((rows_tile, pack * F), lambda i: (i, 0)),
            pl.BlockSpec((pack * F, pack * H), lambda i: (0, 0)),
            pl.BlockSpec((1, pack * H), lambda i: (0, 0)),
            pl.BlockSpec((F, 2 * H), lambda i: (0, 0)),
            pl.BlockSpec((H, 2 * H), lambda i: (0, 0)),
        ]
        operands = (xs, xn, wn, bn, wself, wpool)

    out = pl.pallas_call(
        _make_sage_kernel(masked),
        out_shape=jax.ShapeDtypeStruct((N, 2 * H), out_dtype),
        grid_spec=pltpu.PrefetchScalarGridSpec(
            num_scalar_prefetch=0,
            grid=grid,
            in_specs=in_specs,
            out_specs=pl.BlockSpec((tile, 2 * H), lambda i: (i, 0)),
        ),
        compiler_params=compiler_params,
        cost_estimate=cost,
    )(*operands)

    return out.reshape(B, P, 2 * H)


def sage_layer_reference(x_self, x_neigh, mask, w_self, w_neigh, b_neigh, w_pool):
    h_self = jnp.einsum('bpf,hf->bph', x_self, w_self)
    h_neigh = jnp.einsum('bpsf,hf->bpsh', x_neigh, w_neigh) + b_neigh
    h_neigh = jnp.maximum(h_neigh, 0.0)
    if mask is not None:
        h_neigh = h_neigh * mask
    h_pool = jnp.max(h_neigh, axis=-2)
    h_pool = jnp.einsum('bph,gh->bpg', h_pool, w_pool)
    return jnp.concatenate([h_self, h_pool], axis=-1)


if __name__ == "__main__":
    # Small shapes consistent with the module's forward contract.
    B, P, S = 2, 8, 8            # batch, prior_sample_size, sample_size
    F, H = 32, 32                # input_feature_size, inner_feature_size

    key = jax.random.PRNGKey(0)
    k_xs, k_xn, k_mk, k_ws, k_wn, k_bn, k_wp = jax.random.split(key, 7)

    x_self = jax.random.normal(k_xs, (B, P, F), dtype=jnp.float32)
    x_neigh = jax.random.normal(k_xn, (B, P, S, F), dtype=jnp.float32)
    mask = (jax.random.uniform(k_mk, (B, P, S, 1)) > 0.3).astype(jnp.float32)

    # torch.nn.Linear weight layout: (out_features, in_features).
    w_self = 0.1 * jax.random.normal(k_ws, (H, F), dtype=jnp.float32)
    w_neigh = 0.1 * jax.random.normal(k_wn, (H, F), dtype=jnp.float32)
    b_neigh = 0.1 * jax.random.normal(k_bn, (H,), dtype=jnp.float32)
    w_pool = 0.1 * jax.random.normal(k_wp, (H, H), dtype=jnp.float32)

    # Case 1: small masked case (N=16 -> tile=8, 2 grid steps, divisible grid).
    out = sage_layer_forward(x_self, x_neigh, mask, w_self, w_neigh, b_neigh, w_pool)
    out = jax.block_until_ready(out)
    ref = sage_layer_reference(x_self, x_neigh, mask, w_self, w_neigh, b_neigh, w_pool)
    assert out.shape == (B, P, 2 * H)
    # bf16 streaming + bf16 output -> loosened tolerance (accumulation is f32).
    assert jnp.allclose(out.astype(jnp.float32), ref, atol=4e-2, rtol=4e-2), \
        "mismatch vs reference (masked case)"

    # Case 2: mask=None fast path (no mask / expander operands in the kernel).
    out_nm = sage_layer_forward(x_self, x_neigh, None,
                                w_self, w_neigh, b_neigh, w_pool)
    out_nm = jax.block_until_ready(out_nm)
    ref_nm = sage_layer_reference(x_self, x_neigh, None,
                                  w_self, w_neigh, b_neigh, w_pool)
    assert jnp.allclose(out_nm.astype(jnp.float32), ref_nm, atol=4e-2, rtol=4e-2), \
        "mismatch vs reference (no-mask case)"

    # Case 3: N=400 with tile_nodes=128 -> 4 grid steps with a ragged last
    # block (400 = 3*128 + 16); exercises the no-pad ragged path.
    B2, P2 = 4, 100
    k2 = jax.random.split(jax.random.PRNGKey(1), 3)
    x_self2 = jax.random.normal(k2[0], (B2, P2, F), dtype=jnp.float32)
    x_neigh2 = jax.random.normal(k2[1], (B2, P2, S, F), dtype=jnp.float32)
    mask2 = (jax.random.uniform(k2[2], (B2, P2, S, 1)) > 0.3).astype(jnp.float32)
    out2 = sage_layer_forward(x_self2, x_neigh2, mask2,
                              w_self, w_neigh, b_neigh, w_pool, tile_nodes=128)
    out2 = jax.block_until_ready(out2)
    ref2 = sage_layer_reference(x_self2, x_neigh2, mask2,
                                w_self, w_neigh, b_neigh, w_pool)
    assert out2.shape == (B2, P2, 2 * H)
    assert jnp.allclose(out2.astype(jnp.float32), ref2, atol=4e-2, rtol=4e-2), \
        "mismatch vs reference (ragged case)"

    print("KERNEL_OK")
</pallas_src>

<mosaic_0001>
module attributes {stable_mosaic.version = 11 : i64} {
  func.func @kernel(%arg0: i32, %arg1: memref<8x32xf32, #tpu.memory_space<vmem>>, %arg2: memref<16x128xf32, #tpu.memory_space<vmem>>, %arg3: memref<16x4xf32, #tpu.memory_space<vmem>>, %arg4: memref<128x128xbf16, #tpu.memory_space<vmem>>, %arg5: memref<1x128xf32, #tpu.memory_space<vmem>>, %arg6: memref<4x128xbf16, #tpu.memory_space<vmem>>, %arg7: memref<32x64xbf16, #tpu.memory_space<vmem>>, %arg8: memref<32x64xbf16, #tpu.memory_space<vmem>>, %arg9: memref<8x64xbf16, #tpu.memory_space<vmem>>) attributes {dimension_semantics = [#tpu.dimension_semantics<parallel>], iteration_bounds = array<i64: 2>, scalar_prefetch = 0 : i64, scratch_operands = 0 : i64, tpu.core_type = #tpu.core_type<tc>, window_params = [{transform_indices = @transform_0, window_bounds = array<i64: 8, 32>}, {transform_indices = @transform_1, window_bounds = array<i64: 16, 128>}, {transform_indices = @transform_2, window_bounds = array<i64: 16, 4>}, {pipeline_mode = #tpu.pipeline_mode<synchronous>, transform_indices = @transform_3, window_bounds = array<i64: 128, 128>}, {pipeline_mode = #tpu.pipeline_mode<synchronous>, transform_indices = @transform_4, window_bounds = array<i64: 1, 128>}, {pipeline_mode = #tpu.pipeline_mode<synchronous>, transform_indices = @transform_5, window_bounds = array<i64: 4, 128>}, {pipeline_mode = #tpu.pipeline_mode<synchronous>, transform_indices = @transform_6, window_bounds = array<i64: 32, 64>}, {pipeline_mode = #tpu.pipeline_mode<synchronous>, transform_indices = @transform_7, window_bounds = array<i64: 32, 64>}, {transform_indices = @transform_8, window_bounds = array<i64: 8, 64>}]} {
    %c0 = arith.constant 0 : index
    %c0_0 = arith.constant 0 : index
    %0 = vector.load %arg4[%c0, %c0_0] : memref<128x128xbf16, #tpu.memory_space<vmem>>, vector<128x128xbf16>
    %c0_1 = arith.constant 0 : index
    %c0_2 = arith.constant 0 : index
    %1 = vector.load %arg5[%c0_1, %c0_2] : memref<1x128xf32, #tpu.memory_space<vmem>>, vector<1x128xf32>
    %c0_3 = arith.constant 0 : index
    %c0_4 = arith.constant 0 : index
    %2 = vector.load %arg7[%c0_3, %c0_4] : memref<32x64xbf16, #tpu.memory_space<vmem>>, vector<32x64xbf16>
    %c0_5 = arith.constant 0 : index
    %c0_6 = arith.constant 0 : index
    %3 = vector.load %arg8[%c0_5, %c0_6] : memref<32x64xbf16, #tpu.memory_space<vmem>>, vector<32x64xbf16>
    %c0_7 = arith.constant 0 : index
    %c0_8 = arith.constant 0 : index
    %4 = vector.load %arg6[%c0_7, %c0_8] : memref<4x128xbf16, #tpu.memory_space<vmem>>, vector<4x128xbf16>
    %c0_i32 = arith.constant 0 : i32
    %c8_i32 = arith.constant 8 : i32
    %5 = arith.muli %c0_i32, %c8_i32 : i32
    %6 = tpu.assume_multiple %5, 8 : i32
    %c16_i32 = arith.constant 16 : i32
    %7 = arith.muli %c0_i32, %c16_i32 : i32
    %8 = tpu.assume_multiple %7, 16 : i32
    %9 = arith.index_cast %8 : i32 to index
    %c0_9 = arith.constant 0 : index
    %10 = vector.load %arg2[%9, %c0_9] : memref<16x128xf32, #tpu.memory_space<vmem>>, vector<16x128xf32>
    %11 = arith.truncf %10 : vector<16x128xf32> to vector<16x128xbf16>
    %cst = arith.constant dense<0.000000e+00> : vector<16x128xf32>
    %12 = tpu.matmul %11, %0, %cst {dimension_numbers = #tpu.dot_dimension_numbers<[1], [0], [0], [1], [0, 0, 1, 1], [], []>} : vector<16x128xbf16>, vector<128x128xbf16>, vector<16x128xf32> -> vector<16x128xf32>
    %13 = vector.broadcast %1 : vector<1x128xf32> to vector<16x128xf32>
    %14 = arith.addf %12, %13 : vector<16x128xf32>
    %cst_10 = arith.constant 0.000000e+00 : f32
    %15 = vector.broadcast %cst_10 : f32 to vector<16x128xf32>
    %16 = arith.maximumf %14, %15 : vector<16x128xf32>
    %17 = arith.index_cast %8 : i32 to index
    %c0_11 = arith.constant 0 : index
    %18 = vector.load %arg3[%17, %c0_11] : memref<16x4xf32, #tpu.memory_space<vmem>>, vector<16x4xf32>
    %19 = arith.truncf %18 : vector<16x4xf32> to vector<16x4xbf16>
    %cst_12 = arith.constant dense<0.000000e+00> : vector<16x128xf32>
    %20 = tpu.matmul %19, %4, %cst_12 {dimension_numbers = #tpu.dot_dimension_numbers<[1], [0], [0], [1], [0, 0, 1, 1], [], []>} : vector<16x4xbf16>, vector<4x128xbf16>, vector<16x128xf32> -> vector<16x128xf32>
    %21 = arith.mulf %16, %20 : vector<16x128xf32>
    %22 = vector.shape_cast %21 : vector<16x128xf32> to vector<8x2x128xf32>
    %cst_13 = arith.constant dense<0xFF800000> : vector<8x128xf32>
    %23 = vector.multi_reduction <maximumf>, %22, %cst_13 [1] : vector<8x2x128xf32> to vector<8x128xf32>
    %c64_i32 = arith.constant 64 : i32
    %24 = tpu.dynamic_rotate %23 by %c64_i32 dim 1 : vector<8x128xf32>, i32 -> vector<8x128xf32>
    %25 = arith.maximumf %23, %24 : vector<8x128xf32>
    %c32_i32 = arith.constant 32 : i32
    %26 = tpu.dynamic_rotate %25 by %c32_i32 dim 1 : vector<8x128xf32>, i32 -> vector<8x128xf32>
    %27 = arith.maximumf %25, %26 : vector<8x128xf32>
    %28 = vector.extract_strided_slice %27 {offsets = [0, 0], sizes = [8, 32], strides = [1, 1]} : vector<8x128xf32> to vector<8x32xf32>
    %29 = arith.truncf %28 : vector<8x32xf32> to vector<8x32xbf16>
    %30 = arith.index_cast %6 : i32 to index
    %c0_14 = arith.constant 0 : index
    %31 = vector.load %arg1[%30, %c0_14] : memref<8x32xf32, #tpu.memory_space<vmem>>, vector<8x32xf32>
    %32 = arith.truncf %31 : vector<8x32xf32> to vector<8x32xbf16>
    %cst_15 = arith.constant dense<0.000000e+00> : vector<8x64xf32>
    %33 = tpu.matmul %32, %2, %cst_15 {dimension_numbers = #tpu.dot_dimension_numbers<[1], [0], [0], [1], [0, 0, 1, 1], [], []>} : vector<8x32xbf16>, vector<32x64xbf16>, vector<8x64xf32> -> vector<8x64xf32>
    %cst_16 = arith.constant dense<0.000000e+00> : vector<8x64xf32>
    %34 = tpu.matmul %29, %3, %cst_16 {dimension_numbers = #tpu.dot_dimension_numbers<[1], [0], [0], [1], [0, 0, 1, 1], [], []>} : vector<8x32xbf16>, vector<32x64xbf16>, vector<8x64xf32> -> vector<8x64xf32>
    %35 = arith.addf %33, %34 : vector<8x64xf32>
    %36 = arith.truncf %35 : vector<8x64xf32> to vector<8x64xbf16>
    %37 = arith.index_cast %6 : i32 to index
    %c0_17 = arith.constant 0 : index
    %38 = vector.load %arg9[%37, %c0_17] : memref<8x64xbf16, #tpu.memory_space<vmem>>, vector<8x64xbf16>
    tpu.vector_store %arg9[%37, %c0_17], %36 {strides = array<i32>} : memref<8x64xbf16, #tpu.memory_space<vmem>>, vector<8x64xbf16>,
    %c1_i32 = arith.constant 1 : i32
    return
  }
  func.func @transform_0(%arg0: i32) -> (i32, i32) {
    %c0_i32 = arith.constant 0 : i32
    %c0_i32_0 = arith.constant 0 : i32
    return %arg0, %c0_i32 : i32, i32
  }
  func.func @transform_1(%arg0: i32) -> (i32, i32) {
    %c0_i32 = arith.constant 0 : i32
    %c0_i32_0 = arith.constant 0 : i32
    return %arg0, %c0_i32 : i32, i32
  }
  func.func @transform_2(%arg0: i32) -> (i32, i32) {
    %c0_i32 = arith.constant 0 : i32
    %c0_i32_0 = arith.constant 0 : i32
    return %arg0, %c0_i32 : i32, i32
  }
  func.func @transform_3(%arg0: i32) -> (i32, i32) {
    %c0_i32 = arith.constant 0 : i32
    %c0_i32_0 = arith.constant 0 : i32
    %c0_i32_1 = arith.constant 0 : i32
    return %c0_i32, %c0_i32_0 : i32, i32
  }
  func.func @transform_4(%arg0: i32) -> (i32, i32) {
    %c0_i32 = arith.constant 0 : i32
    %c0_i32_0 = arith.constant 0 : i32
    %c0_i32_1 = arith.constant 0 : i32
    return %c0_i32, %c0_i32_0 : i32, i32
  }
  func.func @transform_5(%arg0: i32) -> (i32, i32) {
    %c0_i32 = arith.constant 0 : i32
    %c0_i32_0 = arith.constant 0 : i32
    %c0_i32_1 = arith.constant 0 : i32
    return %c0_i32, %c0_i32_0 : i32, i32
  }
  func.func @transform_6(%arg0: i32) -> (i32, i32) {
    %c0_i32 = arith.constant 0 : i32
    %c0_i32_0 = arith.constant 0 : i32
    %c0_i32_1 = arith.constant 0 : i32
    return %c0_i32, %c0_i32_0 : i32, i32
  }
  func.func @transform_7(%arg0: i32) -> (i32, i32) {
    %c0_i32 = arith.constant 0 : i32
    %c0_i32_0 = arith.constant 0 : i32
    %c0_i32_1 = arith.constant 0 : i32
    return %c0_i32, %c0_i32_0 : i32, i32
  }
  func.func @transform_8(%arg0: i32) -> (i32, i32) {
    %c0_i32 = arith.constant 0 : i32
    %c0_i32_0 = arith.constant 0 : i32
    return %arg0, %c0_i32 : i32, i32
  }
}

</mosaic_0001>

<bundles_post_ra>
// kernel: tpu_custom_call.1
= control target key start
LH: loop header
LB: loop body
LE: loop exit
PB: predicated region body
PF: predicated region fallthrough
CT: control target
= control target key end

     0   :  { %s1569_s0 = inlined_call_operand.hbm [shape: f32[16,32], index: 0, kind: input, shape index: {}]   ;;  %s1570_s1 = inlined_call_operand.vmem [shape: f32[32,128], index: 1, kind: input, shape index: {}]   ;;  %s1571_s2 = inlined_call_operand.vmem [shape: f32[32,4], index: 2, kind: input, shape index: {}]   ;;  %s1572_s3 = inlined_call_operand.hbm [shape: bf16[128,128], index: 3, kind: input, shape index: {}]   ;;  %s1573_s4 = inlined_call_operand.vmem [shape: f32[1,128], index: 4, kind: input, shape index: {}]   ;;  %s1574_s5 = inlined_call_operand.vmem [shape: bf16[4,128], index: 5, kind: input, shape index: {}]   ;;  %s1575_s6 = inlined_call_operand.hbm [shape: bf16[32,64], index: 6, kind: input, shape index: {}]   ;;  %s1576_s7 = inlined_call_operand.hbm [shape: bf16[32,64], index: 7, kind: input, shape index: {}]   ;;  %s1577_s8 = inlined_call_operand.hbm [shape: bf16[16,64], index: 8, kind: output, shape index: {}]  }
   0x1   :  { %1578 = sst [smem:[#allocation15_spill]] %s1572_s3 }
   0x2   :  { %1579 = sst [smem:[#allocation16_spill]] %s1575_s6 }
   0x3   :  { %13 = vsyncpa [#allocation3], 0 }
   0x4   :  { %15 = vsyncpa [#allocation3 + $0x1], 0 }
   0x5   :  { %16 = vsyncpa [#allocation6], 0 }
   0x6   :  { %17 = vsyncpa [#allocation9], 0 }
   0x7   :  { %18 = vsyncpa [#allocation4], 0 }
   0x8   :  { %20 = vsyncpa [#allocation4 + $0x1], 0  ;;  %s1364_s27 = smov 0   ;;  %s1366_s28 = smov 0  }
   0x9   :  { %s1368_s29 = smov 0   ;;  %s1370_s30 = smov 0  }
   0xa LB: > { %s1580_s3 = sld [smem:[#allocation15_spill]]  ;;  %s1388_s12 = sadd.s32 4294967295, %s1310_s30   ;;  %s1310_s30 = sphi %s1370_s30, %s1592_s30   ;;  %s1306_s29 = sphi %s1368_s29, %s1591_s29   ;;  %s1302_s28 = sphi %s1366_s28, %s1590_s28   ;;  %s1298_s27 = sphi %s1364_s27, %s1589_s27  }
   0xb   : > { %p950_p0 = scmp.ge.s32.totalorder %s1310_s30, 1  ;;  %p47_p1 = scmp.eq.s32.totalorder %s1388_s12, 0 }
   0xc   : > { %p240_p2 = scmp.lt.s32.totalorder %s1310_s30, 3  ;;  %s1312_s14 = smov [#allocation5]  }
   0xd   : > { %s253_s15 = sshll.u32 %s1312_s14, 4  ;;  %s1582_s6 = sld [smem:[#allocation16_spill]]  ;;  %s254_s15 = int_to_ptr.vmem [resolvable:$true] %s253_s15 }
   0xe   : > { %p1393_p3 = pnand %p950_p0, %p240_p2  ;;  %s285_s22 = sshll.u32 %s1576_s7, 4  ;;  %s286_s22 = int_to_ptr.hbm [resolvable:$true] %s285_s22 }
   0xf   : > { %s1313_s23 = smov [#allocation7]   ;;  %s1314_s25 = smov 64  }
  0x10   : > { %s251_s11 = sshll.u32 %s1580_s3, 4  ;;  %p1050_p4 = pneg %p1393_p3  ;;  %s252_s11 = int_to_ptr.hbm [resolvable:$true] %s251_s11 }
  0x11   : > { %s273_s24 = sshll.u32 %s1313_s23, 4  ;;  %s1315_s26 = smov 4   ;;  %s274_s24 = int_to_ptr.vmem [resolvable:$true] %s273_s24 }
  0x12   : > { %p1405_p6 = pnand %p1050_p4, %p47_p1  ;;  %s1316_s9 = smov [#allocation8]  }
  0x13   : > { %s271_s18 = sshll.u32 %s1582_s6, 4  ;;  %s287_s10 = sshll.u32 %s1316_s9, 4  ;;  %s272_s18 = int_to_ptr.hbm [resolvable:$true] %s271_s18  ;;  %s288_s10 = int_to_ptr.vmem [resolvable:$true] %s287_s10 }
  0x14   : > { %1053 = dma.hbm_to_vmem [thread:$0]  (!%p1405_p6), %s252_s11, 1024, %s254_s15, [#allocation6], %s1314_s25, %s1314_s25, %s1315_s26  }
  0x15   : > { %1056 = dma.hbm_to_vmem [thread:$0]  (!%p1405_p6), %s272_s18, 256, %s274_s24, [#allocation6], %s1314_s25, %s1314_s25, %s1315_s26  }
  0x16   : > { %1059 = dma.hbm_to_vmem [thread:$0]  (!%p1405_p6), %s286_s22, 256, %s288_s10, [#allocation9], %s1314_s25, %s1314_s25, %s1315_s26  }
  0x17   : > { %s949_s14 = sadd.s32 4294967294, %s1310_s30   ;;  %s1420_s16 = sadd.s32 1, %s1310_s30  }
  0x18   : > { %s33_s17 = sadd.s32 1, %s1306_s29  ;;  %s30_s11 = ssub.s32 %s1310_s30, %s1420_s16 }
  0x19   : > { %p40_p7 = scmp.ne.s32.totalorder %s1306_s29, %s1302_s28  ;;  %p31_p8 = scmp.eq.s32.totalorder %s30_s11, 0 }
  0x1a   : > { %p41_p9 = scmp.eq.s32.totalorder %s1310_s30, 0  ;;  %p46_p10 = scmp.ne.s32.totalorder %s1302_s28, %s1298_s27 }
  0x1b   : > { %p227_p11 = scmp.eq.s32.totalorder %s1388_s12, 1  ;;  %p233_p0 = scmp.eq.s32.totalorder %s949_s14, 1 }
  0x1c   : > { %s1432_s15 = scalar_select %p31_p8, %s1306_s29, %s33_s17  }
  0x1d   : > { %p1436_p12 = por %p47_p1, %p46_p10  ;;  %p1440_p13 = por %p227_p11, %p40_p7 }
  0x1e   : > { %p42_p2 = por %p41_p9, %p40_p7  ;;  %s301_s20 = sand.u32 1, %s1306_s29  }
  0x1f   : > { %p1445_p4 = por %p233_p0, %p46_p10  ;;  %p1071_p6 = scmp.lt.s32.totalorder %s1310_s30, 2 }
  0x20   : > { %s955_s22 = sshll.u32 %s301_s20, 3  ;;  %s956_s23 = sshll.u32 %s1310_s30, 3 }
  0x21   : > { %s309_s26 = scalar_lea.hbm %s1569_s0, %s956_s23  ;;  %s305_s10 = scalar_lea.vmem [#allocation2], %s955_s22 }
  0x22   : > { %s311_s9 = sshll.u32 %s309_s26, 4  ;;  %s313_s17 = sshll.u32 %s305_s10, 4  ;;  %s312_s9 = int_to_ptr.hbm [resolvable:$true] %s311_s9  ;;  %s314_s17 = int_to_ptr.vmem [resolvable:$true] %s313_s17 }
  0x23   : > { %p1454_p8 = pnand %p1071_p6, %p42_p2  ;;  %s302_s11 = scalar_lea.sflag [#allocation3], %s301_s20 }
  0x24   : > { %s1206_s3 = sshra.s32 %s312_s9, 4  ;;  %s1213_s22 = scalar_lea.hbm %s1569_s0, 16  ;;  %s1207_s3 = int_to_ptr.hbm [resolvable:$true] %s1206_s3 }
  0x25   : > { %s1208_s6 = scalar_lea.hbm %s1207_s3, 8  ;;  %p1210_p9 = pneg %p1454_p8 }
  0x26   : > { %p1209_p7 = scmp.ne.s32.totalorder %s1207_s3, %s1208_s6  ;;  %p1214_p0 = scmp.lt.s32.totalorder %s1207_s3, %s1569_s0 }
  0x27   : > { %p1215_p2 = scmp.lt.s32.totalorder %s1213_s22, %s1208_s6 }
  0x28   : > { %p1211_p10 = pnand %p1210_p9, %p1209_p7 }
  0x29   : > { %p1216_p6 = por %p1215_p2, %p1214_p0 }
  0x2a   : > { %p1212_p11 = pneg %p1211_p10 }
  0x2c   : > { %p1217_p5 = pnand %p1216_p6, %p1212_p11 }
  0x2e   : > { %1220 = shalt.err (!%p1217_p5)
}
  0x2f   : > { %1063 = dma.hbm_to_vmem [thread:$0]  (!%p1454_p8), %s312_s9, 128, %s314_s17, %s302_s11  }
  0x30   : > { %340 = sbr.rel (%p1393_p3) target bundleno = 650 (0x28a), region = 52  ;;  %s1471_s20 = sand.u32 (!%p1393_p3), 1, %s1302_s28  }
  0x31   : > { %s958_s10 = sshll.u32 (!%p1393_p3), %s1471_s20, 3  ;;  %s343_s23 = scalar_lea.sflag (!%p1393_p3), [#allocation3], %s1471_s20 }
  0x32   : > { %s1475_s24 = scalar_lea.vmem (!%p1393_p3), [#allocation2], %s958_s10 }
  0x35   : > { %1281 = dma.done.wait (%p1436_p12), %s343_s23, 128  }
  0x36   : > { %1283 = vsyncadd (%p1436_p12), %s343_s23, 4294967168 }
  0x37   : > { %1285 = dma.done.wait (%p47_p1), [#allocation6], 1280  }
  0x38   : > { %1287 = vsyncadd (%p47_p1), [#allocation6], 4294966016 }
  0x39   : > { %1289 = dma.done.wait (%p47_p1), [#allocation9], 256  }
  0x3a   : > { %1291 = vsyncadd (%p47_p1), [#allocation9], 4294967040  ;;  %s963_s3 = sshll.u32 %s1388_s12, 1  ;;  %v1029_v0 = vld [vmem:[#allocation5 + $0x38] sm:$0xff]  ;;  %vm521_vm0 = vcmask 1041408   ;;  %v1028_v1 = vld [vmem:[#allocation5 + $0x30] sm:$0xff] }
  0x3b   : > { %p406_p3 = scmp.lt.s32.totalorder %s963_s3, 3  ;;  %498 = vmatpush.bf16.msra.mxu0 %v1029_v0  ;;  %v443_v2 = vld [vmem:[%s1574_s5] sm:$0x3]  ;;  %vm517_vm1 = vcmask 31744   ;;  %v1027_v7 = vld [vmem:[#allocation5 + $0x28] sm:$0xff]  ;;  %v1026_v8 = vld [vmem:[#allocation5 + $0x20] sm:$0xff] }
  0x3c   : > { %v523_v4 = vsel %vm521_vm0, %v443_v2, 0  ;;  %v1025_v9 = vld [vmem:[#allocation5 + $0x18] sm:$0xff]  ;;  %v1024_v10 = vld [vmem:[#allocation5 + $0x10] sm:$0xff]  ;;  %v1023_v11 = vld [vmem:[#allocation5 + $0x8] sm:$0xff]  ;;  %vm619_vm2 = vcmask 1041409   ;;  %vm621_vm3 = vcmask 1042434  }
  0x3d   : > { %s1594_s3 = smov (!%p406_p3, %s963_s3), 3  ;;  %532 = vmatpush.bf16.msra.mxu1 %v523_v4  ;;  %v1022_v12 = vld [vmem:[#allocation5] sm:$0xff]  ;;  %v1115_v16 = vld [vmem:[%s1573_s4] ss:$0 sm:$0xff]  ;;  %vm623_vm4 = vcmask 1043459   ;;  %vm625_vm5 = vcmask 1044484  }
  0x3e   : > { %s964_s6 = sshll.u32 %s1594_s3, 3  ;;  %vm627_vm6 = vcmask 1045509   ;;  %vm629_vm7 = vcmask 1046534   ;;  %vm631_vm8 = vcmask 1047559   ;;  %s1317_s23 = smov 64   ;;  %vm762_vm9 = vcmask 261120  }
  0x3f   : > { %s415_s9 = scalar_lea.vmem %s1571_s2, %s964_s6  ;;  %499 = vmatpush.bf16.msra.mxu0 %v1028_v1  ;;  %s409_s25 = scalar_lea.vmem %s1570_s1, %s964_s6  ;;  %vm808_vm10 = vcmask 519168  }
  0x40   : > { %v514_v3 = vld [vmem:[%s415_s9] sm:$0xff]  ;;  %v515_v5 = vld [vmem:[%s415_s9 + $0x8] sm:$0xff]  ;;  %s1318_s3 = smov 32   ;;  %s1019_s6 = sshll.u32 %s1388_s12, 2 }
  0x41   : > { %v516_v6 = vpack.c.bf16 %v515_v5, %v514_v3  ;;  %v444_v13 = vld [vmem:[%s409_s25] sm:$0xff]  ;;  %v445_v14 = vld [vmem:[%s409_s25 + $0x8] sm:$0xff]  ;;  %s821_s9 = scalar_lea.hbm %s1577_s8, %s1019_s6  ;;  %s811_s22 = scalar_lea.sflag [#allocation4], %s1471_s20 }
  0x42   : > { %v446_v15 = vpack.c.bf16 %v445_v14, %v444_v13  ;;  %s825_s11 = sshll.u32 %s821_s9, 4  ;;  %s826_s11 = int_to_ptr.hbm [resolvable:$true] %s825_s11 }
  0x43   : > { %999 = vmatmul.msk.bf16.vlgmr.msra.gmra.mxu1 %vm517_vm1, %v516_v6  ;;  %500 = vmatpush.bf16.msra.mxu0 %v1027_v7  ;;  %s1250_s25 = sshra.s32 %s826_s11, 4  ;;  %s1251_s25 = int_to_ptr.hbm [resolvable:$true] %s1250_s25 }
  0x44   : > { %s1252_s26 = scalar_lea.hbm %s1251_s25, 4  ;;  %p1257_p8 = scmp.lt.s32.totalorder %s1251_s25, %s1577_s8 }
  0x45   : > { %p1253_p1 = scmp.ne.s32.totalorder %s1251_s25, %s1252_s26 }
  0x47   : > { %501 = vmatpush.bf16.msra.mxu0 %v1026_v8  ;;  %p1254_p5 = pnand %p1253_p1, %p1440_p13 }
  0x49   : > { %p1255_p12 = pneg %p1254_p5 }
  0x4b   : > { %502 = vmatpush.bf16.msra.mxu0 %v1025_v9 }
  0x4f   : > { %503 = vmatpush.bf16.msra.mxu0 %v1024_v10 }
  0x53   : > { %504 = vmatpush.bf16.msra.mxu0 %v1023_v11 }
  0x57   : > { %505 = vmatpush.bf16.msra.mxu0 %v1022_v12 }
  0x5a   : > { %506 = vmatmul.bf16.vlgmr.msra.gmra.mxu0 %v446_v15 }
  0xc0   : > { %v534_v19 = vpop.f32.mrf.mxu1 }
  0xc8   : > { %v536_v41 = vpop.f32.mrf.mxu1 }
  0xd7   : > { %v507_v17 = vpop.f32.mrf.mxu0 }
  0xd8   : > { %v508_v18 = vadd.f32 %v1115_v16, %v507_v17 }
  0xda   : > { %v512_v20 = vmax.f32 %v508_v18, 0.0 }
  0xdc   : > { %v539_v21 = vmul.f32 %v534_v19, %v512_v20 }
  0xde   : > { %v543_v22 = vrot.slane %v539_v21, 2  ;;  %v544_v23 = vrot.slane %v539_v21, 4  ;;  %v545_v24 = vrot.slane %v539_v21, 6  ;;  %v555_v25 = vsel %vm521_vm0, %v539_v21, -inf }
  0xdf   : > { %v556_v26 = vrot.slane %v555_v25, 4  ;;  %v509_v27 = vpop.f32.mrf.mxu0 }
  0xe0   : > { %v562_v28 = vsel %vm521_vm0, %v543_v22, -inf  ;;  %v569_v29 = vsel %vm521_vm0, %v544_v23, -inf  ;;  %v576_v30 = vsel %vm521_vm0, %v545_v24, -inf  ;;  %v510_v31 = vadd.f32 %v1115_v16, %v509_v27 }
  0xe1   : > { %v557_v32 = vmax.f32 %v555_v25, %v556_v26  ;;  %v563_v33 = vrot.slane %v562_v28, 4  ;;  %v570_v34 = vrot.slane %v569_v29, 4  ;;  %v577_v35 = vrot.slane %v576_v30, 4 }
  0xe2   : > { %v513_v36 = vmax.f32 %v510_v31, 0.0 }
  0xe3   : > { %v558_v37 = vrot.slane %v557_v32, 2  ;;  %v564_v38 = vmax.f32 %v562_v28, %v563_v33  ;;  %v571_v39 = vmax.f32 %v569_v29, %v570_v34  ;;  %v578_v40 = vmax.f32 %v576_v30, %v577_v35 }
  0xe4   : > { %v540_v42 = vmul.f32 %v536_v41, %v513_v36 }
  0xe5   : > { %v559_v43 = vmax.f32 %v557_v32, %v558_v37  ;;  %v565_v44 = vrot.slane %v564_v38, 2  ;;  %v572_v45 = vrot.slane %v571_v39, 2  ;;  %v579_v46 = vrot.slane %v578_v40, 2 }
  0xe6   : > { %v546_v47 = vrot.slane %v540_v42, 2  ;;  %v547_v48 = vrot.slane %v540_v42, 4  ;;  %v548_v49 = vrot.slane %v540_v42, 6  ;;  %v583_v50 = vsel %vm521_vm0, %v540_v42, -inf }
  0xe7   : > { %v560_v51 = vrot.slane %v559_v43, 1  ;;  %v566_v52 = vmax.f32 %v564_v38, %v565_v44  ;;  %v573_v53 = vmax.f32 %v571_v39, %v572_v45  ;;  %v584_v54 = vrot.slane %v583_v50, 4 }
  0xe8   : > { %v590_v55 = vsel %vm521_vm0, %v546_v47, -inf  ;;  %v580_v56 = vmax.f32 %v578_v40, %v579_v46  ;;  %v597_v57 = vsel %vm521_vm0, %v547_v48, -inf  ;;  %v604_v58 = vsel %vm521_vm0, %v548_v49, -inf }
  0xe9   : > { %v567_v59 = vrot.slane %v566_v52, 1  ;;  %v574_v60 = vrot.slane %v573_v53, 1  ;;  %v585_v61 = vmax.f32 %v583_v50, %v584_v54  ;;  %v591_v62 = vrot.slane %v590_v55, 4 }
  0xea   : > { %v598_v63 = vrot.slane %v597_v57, 4  ;;  %v605_v0 = vrot.slane %v604_v58, 4  ;;  %v561_v1 = vmax.f32 %v559_v43, %v560_v51  ;;  %v581_v5 = vrot.slane %v580_v56, 1 }
  0xeb   : > { %v568_v2 = vmax.f32 %v566_v52, %v567_v59  ;;  %v586_v3 = vrot.slane %v585_v61, 2  ;;  %v575_v4 = vmax.f32 %v573_v53, %v574_v60  ;;  %v592_v6 = vmax.f32 %v590_v55, %v591_v62  ;;  %v1031_v62 = vld [vmem:[#allocation7 + $0x8] sm:$0xff] }
  0xec   : > { %v599_v7 = vmax.f32 %v597_v57, %v598_v63  ;;  %v606_v8 = vmax.f32 %v604_v58, %v605_v0  ;;  %v582_v16 = vmax.f32 %v580_v56, %v581_v5  ;;  %800 = vmatpush.bf16.msra.mxu3 %v1031_v62  ;;  %v1030_v63 = vld [vmem:[#allocation7] sm:$0xff]  ;;  %v717_v0 = vld [vmem:[%s1475_s24] sm:$0xff]  ;;  %s962_s24 = sshll.u32 %s1471_s20, 2 }
  0xed   : > { %v587_v9 = vmax.f32 %v585_v61, %v586_v3  ;;  %v620_v10 = vsel %vm619_vm2, %v568_v2, %v561_v1  ;;  %v593_v11 = vrot.slane %v592_v6, 2  ;;  %v1032_v3 = vld [vmem:[#allocation8] sm:$0xff]  ;;  %s404_s17 = scalar_lea.vmem [#allocation10], %s962_s24 }
  0xee   : > { %v600_v12 = vrot.slane %v599_v7, 2  ;;  %v607_v13 = vrot.slane %v606_v8, 2  ;;  %v622_v15 = vsel %vm621_vm3, %v575_v4, %v620_v10  ;;  %s823_s14 = sshll.u32 %s404_s17, 4  ;;  %s824_s14 = int_to_ptr.vmem [resolvable:$true] %s823_s14 }
  0xef   : > { %v588_v14 = vrot.slane %v587_v9, 1  ;;  %v594_v17 = vmax.f32 %v592_v6, %v593_v11  ;;  %v624_v24 = vsel %vm623_vm4, %v582_v16, %v622_v15 }
  0xf0   : > { %v601_v18 = vmax.f32 %v599_v7, %v600_v12  ;;  %v608_v19 = vmax.f32 %v606_v8, %v607_v13  ;;  %801 = vmatpush.bf16.msra.mxu3 %v1030_v63 }
  0xf1   : > { %v589_v20 = vmax.f32 %v587_v9, %v588_v14  ;;  %v595_v21 = vrot.slane %v594_v17, 1 }
  0xf2   : > { %v602_v22 = vrot.slane %v601_v18, 1  ;;  %v609_v23 = vrot.slane %v608_v19, 1 }
  0xf3   : > { %v626_v25 = vsel %vm625_vm5, %v589_v20, %v624_v24  ;;  %v596_v26 = vmax.f32 %v594_v17, %v595_v21 }
  0xf4   : > { %v603_v27 = vmax.f32 %v601_v18, %v602_v22  ;;  %v610_v28 = vmax.f32 %v608_v19, %v609_v23 }
  0xf5   : > { %v628_v29 = vsel %vm627_vm6, %v596_v26, %v626_v25 }
  0xf6   : > { %v630_v30 = vsel %vm629_vm7, %v603_v27, %v628_v29 }
  0xf7   : > { %v632_v31 = vsel %vm631_vm8, %v610_v28, %v630_v30 }
  0xf8   : > { %634 = vrot.lane.b32.xlu0 %v632_v31, %s1317_s23  ;;  %s1256_s23 = scalar_lea.hbm %s1577_s8, 8 }
  0xf9   : > { %p1258_p7 = scmp.lt.s32.totalorder %s1256_s23, %s1252_s26 }
  0xfb   : > { %p1259_p9 = por %p1258_p7, %p1257_p8 }
  0xfd   : > { %p1260_p10 = pnand %p1259_p9, %p1255_p12 }
 0x16a   : > { %v635_v32 = vpop.permute.xlu0 %634 }
 0x16b   : > { %v637_v33 = vrot.slane %v635_v32, 1  ;;  %v638_v34 = vrot.slane %v635_v32, 2  ;;  %v639_v35 = vrot.slane %v635_v32, 3  ;;  %v640_v36 = vrot.slane %v635_v32, 4 }
 0x16c   : > { %v641_v37 = vrot.slane %v635_v32, 5  ;;  %v642_v38 = vrot.slane %v635_v32, 6  ;;  %v643_v39 = vrot.slane %v635_v32, 7  ;;  %v652_v44 = vmax.f32 %v561_v1, %v635_v32  ;;  %v1033_v1 = vld [vmem:[#allocation8 + $0x8] sm:$0xff] }
 0x16d   : > { %v653_v40 = vmax.f32 %v568_v2, %v637_v33  ;;  %v654_v41 = vmax.f32 %v575_v4, %v638_v34  ;;  %v655_v42 = vmax.f32 %v582_v16, %v639_v35  ;;  %v656_v43 = vmax.f32 %v589_v20, %v640_v36  ;;  %772 = vmatpush.bf16.msra.mxu2 %v1033_v1 }
 0x16e   : > { %v657_v45 = vmax.f32 %v596_v26, %v641_v37  ;;  %v658_v48 = vmax.f32 %v603_v27, %v642_v38  ;;  %v659_v49 = vmax.f32 %v610_v28, %v643_v39  ;;  %v718_v2 = vpack.c.bf16 %v717_v0, %v717_v0 }
 0x16f   : > { %v668_v46 = vrot.slane %v653_v40, 7  ;;  %v670_v47 = vrot.slane %v654_v41, 6  ;;  %v672_v51 = vrot.slane %v655_v42, 5  ;;  %v674_v53 = vrot.slane %v656_v43, 4 }
 0x170   : > { %v676_v55 = vrot.slane %v657_v45, 3  ;;  %v678_v57 = vrot.slane %v658_v48, 2  ;;  %v680_v59 = vrot.slane %v659_v49, 1  ;;  %1017 = vmatmul.msk.bf16.vlgmr.msra.gmra.mxu3 %vm762_vm9, %v718_v2 }
 0x171   : > { %v669_v50 = vsel %vm619_vm2, %v668_v46, %v652_v44  ;;  %773 = vmatpush.bf16.msra.mxu2 %v1032_v3 }
 0x172   : > { %v671_v52 = vsel %vm621_vm3, %v670_v47, %v669_v50 }
 0x173   : > { %v673_v54 = vsel %vm623_vm4, %v672_v51, %v671_v52 }
 0x174   : > { %v675_v56 = vsel %vm625_vm5, %v674_v53, %v673_v54 }
 0x175   : > { %v677_v58 = vsel %vm627_vm6, %v676_v55, %v675_v56 }
 0x176   : > { %v679_v60 = vsel %vm629_vm7, %v678_v57, %v677_v58 }
 0x177   : > { %v681_v61 = vsel %vm631_vm8, %v680_v59, %v679_v60 }
 0x178   : > { %683 = vrot.lane.b32.xlu0 %v681_v61, %s1318_s3 }
 0x1ea   : > { %v684_v4 = vpop.permute.xlu0 %683 }
 0x1eb   : > { %v686_v5 = vrot.slane %v684_v4, 1  ;;  %v687_v6 = vrot.slane %v684_v4, 2  ;;  %v688_v7 = vrot.slane %v684_v4, 3  ;;  %v689_v8 = vrot.slane %v684_v4, 4 }
 0x1ec   : > { %v690_v9 = vrot.slane %v684_v4, 5  ;;  %v701_v10 = vmax.f32 %v652_v44, %v684_v4  ;;  %v691_v11 = vrot.slane %v684_v4, 6  ;;  %v692_v12 = vrot.slane %v684_v4, 7 }
 0x1ed   : > { %v702_v13 = vmax.f32 %v653_v40, %v686_v5  ;;  %v703_v14 = vmax.f32 %v654_v41, %v687_v6  ;;  %v704_v15 = vmax.f32 %v655_v42, %v688_v7  ;;  %v705_v16 = vmax.f32 %v656_v43, %v689_v8 }
 0x1ee   : > { %v709_v17 = vpack.c.bf16 %v701_v10, %v701_v10  ;;  %v706_v18 = vmax.f32 %v657_v45, %v690_v9  ;;  %v707_v19 = vmax.f32 %v658_v48, %v691_v11  ;;  %v708_v20 = vmax.f32 %v659_v49, %v692_v12 }
 0x1ef   : > { %v710_v21 = vpack.c.bf16 %v702_v13, %v702_v13  ;;  %v711_v22 = vpack.c.bf16 %v703_v14, %v703_v14  ;;  %v712_v23 = vpack.c.bf16 %v704_v15, %v704_v15  ;;  %v713_v24 = vpack.c.bf16 %v705_v16, %v705_v16 }
 0x1f0   : > { %v714_v25 = vpack.c.bf16 %v706_v18, %v706_v18  ;;  %v715_v26 = vpack.c.bf16 %v707_v19, %v707_v19  ;;  %v716_v29 = vpack.c.bf16 %v708_v20, %v708_v20  ;;  %v727_v32 = vunpack.c.l.b16 %v709_v17 }
 0x1f1   : > { %v728_v27 = vunpack.c.l.b16 %v710_v21  ;;  %v729_v28 = vunpack.c.l.b16 %v711_v22  ;;  %v730_v30 = vunpack.c.l.b16 %v712_v23  ;;  %v731_v31 = vunpack.c.l.b16 %v713_v24 }
 0x1f2   : > { %v732_v35 = vunpack.c.l.b16 %v714_v25  ;;  %v733_v36 = vunpack.c.l.b16 %v715_v26  ;;  %v734_v37 = vunpack.c.l.b16 %v716_v29 }
 0x1f3   : > { %v735_v33 = vrot.slane %v728_v27, 7  ;;  %v737_v34 = vrot.slane %v729_v28, 6  ;;  %v739_v39 = vrot.slane %v730_v30, 5  ;;  %v741_v41 = vrot.slane %v731_v31, 4  ;;  %v803_v51 = vpop.f32.mrf.mxu3 }
 0x1f4   : > { %v743_v43 = vrot.slane %v732_v35, 3  ;;  %v745_v45 = vrot.slane %v733_v36, 2  ;;  %v747_v47 = vrot.slane %v734_v37, 1 }
 0x1f5   : > { %v736_v38 = vsel %vm619_vm2, %v735_v33, %v727_v32 }
 0x1f6   : > { %v738_v40 = vsel %vm621_vm3, %v737_v34, %v736_v38 }
 0x1f7   : > { %v740_v42 = vsel %vm623_vm4, %v739_v39, %v738_v40 }
 0x1f8   : > { %v742_v44 = vsel %vm625_vm5, %v741_v41, %v740_v42 }
 0x1f9   : > { %v744_v46 = vsel %vm627_vm6, %v743_v43, %v742_v44 }
 0x1fa   : > { %v746_v48 = vsel %vm629_vm7, %v745_v45, %v744_v46 }
 0x1fb   : > { %v748_v49 = vsel %vm631_vm8, %v747_v47, %v746_v48  ;;  %v805_v52 = vpop.f32.mrf.mxu3 }
 0x1fc   : > { %v749_v50 = vpack.c.b16 %v748_v49, %v748_v49 }
 0x1fe   : > { %1008 = vmatmul.msk.bf16.vlgmr.msra.gmra.mxu2 %vm762_vm9, %v749_v50 }
 0x281   : > { %v775_v53 = vpop.f32.mrf.mxu2 }
 0x282   : > { %v804_v54 = vadd.f32 %v803_v51, %v775_v53 }
 0x284   : > { %v807_v55 = vpack.c.bf16 %v804_v54, %v804_v54 }
 0x286   : > { %809 = vst.msk [vmem:[%s404_s17] sm:$0xf] %vm808_vm10, %v807_v55 }
 0x287   : > { %1263 = shalt.err (!%p1260_p10)
}
 0x288   : > { %1048 = dma.vmem_to_hbm [thread:$0]  (%p1440_p13), %s824_s14, 64, %s826_s11, %s811_s22  }
 0x289   : > { %v777_v56 = vpop.f32.mrf.mxu2 }
 0x28a PF: > { %s837_s20 = sand.u32 1, %s1298_s27   ;;  %p1588_p11 = scmp.ge.s32.totalorder %s1310_s30, 2 }
 0x28b   : > { %s838_s6 = scalar_lea.sflag [#allocation4], %s837_s20 }
 0x28c   : > { %p1065_p0 = pnand %p1588_p11, %p1445_p4 }
 0x28e   : > { %p1066_p2 = pneg %p1065_p0 }
 0x290   : > { %1293 = dma.done.wait (%p1066_p2), %s838_s6, 64  }
 0x291   : > { %1295 = vsyncadd (%p1066_p2), %s838_s6, 4294967232  ;;  %p23_p6 = scmp.ge.s32.totalorder %s1420_s16, 4   ;;  %s1589_s27 = smov %s1302_s28 }
 0x292   : > { %s1590_s28 = smov %s1306_s29  ;;  %s1591_s29 = smov %s1432_s15 }
 0x293   : > { %s1592_s30 = smov %s1420_s16  ;;  %25 = sbr.rel (!%p23_p6) target bundleno = 10 (0xa), region = 115 }
 0x298   :  { %844 = vsyncpa [#allocation3], 1 }
 0x299   :  { %846 = vsyncpa [#allocation3 + $0x1], 1 }
 0x29a   :  { %847 = vsyncpa [#allocation6], 1 }
 0x29b   :  { %848 = vsyncpa [#allocation9], 1 }
 0x29c   :  { %849 = vsyncpa [#allocation4], 1 }
 0x29d   :  { %851 = vsyncpa [#allocation4 + $0x1], 1 }

</bundles_post_ra>
